<compile_context>
chip_gen: v7x
topology: tpu7x:2x2x1
jax: 0.10.0
libtpu: 0.0.40
codegen_flags: <defaults>
</compile_context>

<pallas_src>
import functools
import math

import jax
import jax.numpy as jnp
from jax.experimental import pallas as pl
from jax.experimental.pallas import tpu as pltpu


def conv_block_kernel(x_ref, w_ref, scale_ref, shift_ref, o_ref, *,
                      tile_h, Wo, KH, KW, act):
    """One grid step = one sample (VMEM-resident) x one tile of output rows.

    x_ref:     (1, Hp, Wp, Cin)        padded input sample (resident across h tiles)
    w_ref:     (KH, KW, Cin, Cout_p)   weights, native dtype, resident
    scale_ref: (1, Cout_p) f32         folded conv-bias / BatchNorm scale
    shift_ref: (1, Cout_p) f32
    o_ref:     (1, tile_h, Wo, Cout_p) lane-dense output tile
    """
    Cin = x_ref.shape[-1]
    Cout_p = o_ref.shape[-1]
    h0 = pl.program_id(1) * tile_h          # first output row of this tile

    # f32 accumulator bounded to the tile (stays in vregs; ~tile_h*Wo x 128).
    acc = jnp.zeros((tile_h * Wo, Cout_p), jnp.float32)

    # 3x3 conv as KH*KW shifted [tile_h*Wo, Cin] x [Cin, Cout_p] MXU matmuls.
    # Each tap slab is read straight from the ref (no whole-tensor copy/upcast).
    for kh in range(KH):
        for kw in range(KW):
            patch = x_ref[0, pl.ds(h0 + kh, tile_h), kw:kw + Wo, :]
            acc = acc + jnp.dot(
                patch.reshape(tile_h * Wo, Cin),
                w_ref[kh, kw],
                preferred_element_type=jnp.float32,
            )

    # Per-output-channel affine: folds conv bias and inference-mode BatchNorm.
    acc = acc * scale_ref[...] + shift_ref[...]
    if act:
        acc = jnp.maximum(acc, 0.0)

    o_ref[...] = acc.reshape(1, tile_h, Wo, Cout_p).astype(o_ref.dtype)


def conv_block(x_nchw, weight, bias, *, padding=1, act=True, norm=False,
               bn_params=None, eps=1e-5):
    """Forward pass of ConvBlock (stride fixed at 1, the module default).

    x_nchw: (N, Cin, H, W)   weight: (Cout, Cin, KH, KW)   bias: (Cout,)
    bn_params (if norm): (gamma, beta, running_mean, running_var), each (Cout,)
    Returns (N, Cout, Ho, Wo) in NCHW, same dtype as the input.
    """
    N, Cin, H, W = x_nchw.shape
    Cout, Cin_w, KH, KW = weight.shape
    assert Cin == Cin_w

    Ho = H + 2 * padding - KH + 1
    Wo = W + 2 * padding - KW + 1
    Hp, Wp = H + 2 * padding, W + 2 * padding

    # NCHW -> NHWC + spatial zero-pad (kernel consumes the padded NHWC tensor).
    x = jnp.transpose(x_nchw, (0, 2, 3, 1))
    xp = jnp.pad(x, ((0, 0), (padding, padding), (padding, padding), (0, 0)))

    # Lane-dense output channel count (multiple of 128).
    Cout_p = -(-Cout // 128) * 128

    # Weights: (Cout, Cin, KH, KW) -> (KH, KW, Cin, Cout_p), native dtype.
    w = jnp.transpose(weight, (2, 3, 1, 0))
    w = jnp.pad(w, ((0, 0), (0, 0), (0, 0), (0, Cout_p - Cout)))

    # Fold conv bias and (optional) BatchNorm into a per-channel affine.
    if norm:
        # TODO(synk): BatchNorm is inference-mode (running stats); PyTorch
        # training-mode batch statistics are not reproduced here.
        gamma, beta, mean, var = bn_params
        scale = (gamma / jnp.sqrt(var + eps)).astype(jnp.float32)
        shift = (beta - mean * scale + bias * scale).astype(jnp.float32)
    else:
        scale = jnp.ones((Cout,), jnp.float32)
        shift = bias.astype(jnp.float32)
    scale = jnp.pad(scale, (0, Cout_p - Cout)).reshape(1, Cout_p)
    shift = jnp.pad(shift, (0, Cout_p - Cout)).reshape(1, Cout_p)

    # Output-row tile: tile_h*Wo rows feed the MXU M dim (128 rows at 16x16).
    # For larger images pick a bigger multiple of 8 to amortize per-step cost.
    tile_h = 8 if (Ho % 8 == 0) else Ho
    grid = (N, Ho // tile_h)

    kernel = functools.partial(conv_block_kernel, tile_h=tile_h, Wo=Wo,
                               KH=KH, KW=KW, act=act)

    out = pl.pallas_call(
        kernel,
        out_shape=jax.ShapeDtypeStruct((N, Ho, Wo, Cout_p), x.dtype),
        grid=grid,
        in_specs=[
            # Whole padded sample; constant along the row-tile axis so it is
            # fetched once per sample and reused for all of its row tiles.
            pl.BlockSpec((1, Hp, Wp, Cin), lambda n, h: (n, 0, 0, 0)),
            # Resident operands: constant index maps -> single DMA for the grid.
            pl.BlockSpec((KH, KW, Cin, Cout_p), lambda n, h: (0, 0, 0, 0)),
            pl.BlockSpec((1, Cout_p), lambda n, h: (0, 0)),
            pl.BlockSpec((1, Cout_p), lambda n, h: (0, 0)),
        ],
        out_specs=pl.BlockSpec((1, tile_h, Wo, Cout_p),
                               lambda n, h: (n, h, 0, 0)),
        compiler_params=pltpu.CompilerParams(
            dimension_semantics=("parallel", "parallel")),
    )(xp, w, scale, shift)

    # Drop channel padding, back to NCHW.
    return jnp.transpose(out[..., :Cout], (0, 3, 1, 2))


if __name__ == "__main__":
    # Small deterministic config: batch=2, in_channels=4, out_channels=8, 16x16.
    N, Cin, H, W = 2, 4, 16, 16
    Cout, KH, KW = 8, 3, 3

    key = jax.random.PRNGKey(0)
    kx, kwt, kb, kg, kbe, kme, kva = jax.random.split(key, 7)

    x = jax.random.normal(kx, (N, Cin, H, W), dtype=jnp.float32)

    # Deterministic Conv2d-style init (kaiming-uniform-like bounds).
    fan_in = Cin * KH * KW
    bound = 1.0 / math.sqrt(fan_in)
    weight = jax.random.uniform(kwt, (Cout, Cin, KH, KW), jnp.float32, -bound, bound)
    bias = jax.random.uniform(kb, (Cout,), jnp.float32, -bound, bound)

    # Shared conv reference (nn.Conv2d semantics).
    conv_ref = jax.lax.conv_general_dilated(
        x, weight, window_strides=(1, 1), padding=[(1, 1), (1, 1)],
        dimension_numbers=("NCHW", "OIHW", "NCHW"),
    ) + bias.reshape(1, Cout, 1, 1)

    # --- Conv + ReLU (norm=False) ---
    out = conv_block(x, weight, bias, padding=1, act=True, norm=False)
    out = jax.block_until_ready(out)
    ref = jnp.maximum(conv_ref, 0.0)
    if out.shape != ref.shape or not jnp.allclose(out, ref, atol=1e-4, rtol=1e-4):
        raise AssertionError("Pallas ConvBlock mismatch (act=True, norm=False)")

    # --- Conv + BatchNorm (inference) + ReLU (norm=True) ---
    gamma = 1.0 + 0.1 * jax.random.normal(kg, (Cout,), jnp.float32)
    beta = 0.1 * jax.random.normal(kbe, (Cout,), jnp.float32)
    mean = 0.1 * jax.random.normal(kme, (Cout,), jnp.float32)
    var = jax.random.uniform(kva, (Cout,), jnp.float32, 0.5, 1.5)

    out_bn = conv_block(x, weight, bias, padding=1, act=True, norm=True,
                        bn_params=(gamma, beta, mean, var), eps=1e-5)
    out_bn = jax.block_until_ready(out_bn)
    ref_bn = (gamma.reshape(1, Cout, 1, 1)
              * (conv_ref - mean.reshape(1, Cout, 1, 1))
              / jnp.sqrt(var.reshape(1, Cout, 1, 1) + 1e-5)
              + beta.reshape(1, Cout, 1, 1))
    ref_bn = jnp.maximum(ref_bn, 0.0)
    if not jnp.allclose(out_bn, ref_bn, atol=1e-4, rtol=1e-4):
        raise AssertionError("Pallas ConvBlock mismatch (act=True, norm=True)")

    print("KERNEL_OK")
</pallas_src>

<mosaic_0001>
module attributes {stable_mosaic.version = 11 : i64} {
  func.func @conv_block_kernel(%arg0: i32, %arg1: i32, %arg2: memref<1x18x18x4xf32, #tpu.memory_space<vmem>>, %arg3: memref<3x3x4x128xf32, #tpu.memory_space<vmem>>, %arg4: memref<1x128xf32, #tpu.memory_space<vmem>>, %arg5: memref<1x128xf32, #tpu.memory_space<vmem>>, %arg6: memref<1x8x16x128xf32, #tpu.memory_space<vmem>>) attributes {dimension_semantics = [#tpu.dimension_semantics<parallel>, #tpu.dimension_semantics<parallel>], iteration_bounds = array<i64: 2, 2>, scalar_prefetch = 0 : i64, scratch_operands = 0 : i64, tpu.core_type = #tpu.core_type<tc>, window_params = [{transform_indices = @transform_0, window_bounds = array<i64: 1, 18, 18, 4>}, {pipeline_mode = #tpu.pipeline_mode<synchronous>, transform_indices = @transform_1, window_bounds = array<i64: 3, 3, 4, 128>}, {pipeline_mode = #tpu.pipeline_mode<synchronous>, transform_indices = @transform_2, window_bounds = array<i64: 1, 128>}, {pipeline_mode = #tpu.pipeline_mode<synchronous>, transform_indices = @transform_3, window_bounds = array<i64: 1, 128>}, {transform_indices = @transform_4, window_bounds = array<i64: 1, 8, 16, 128>}]} {
    %c8_i32 = arith.constant 8 : i32
    %0 = arith.muli %arg1, %c8_i32 : i32
    %cst = arith.constant 0.000000e+00 : f32
    %1 = vector.broadcast %cst : f32 to vector<128x128xf32>
    %c0_i32 = arith.constant 0 : i32
    %2 = arith.addi %0, %c0_i32 : i32
    %c0 = arith.constant 0 : index
    %3 = arith.index_cast %2 : i32 to index
    %c0_0 = arith.constant 0 : index
    %c0_1 = arith.constant 0 : index
    %4 = vector.load %arg2[%c0, %3, %c0_0, %c0_1] : memref<1x18x18x4xf32, #tpu.memory_space<vmem>>, vector<1x8x16x4xf32>
    %5 = vector.shape_cast %4 : vector<1x8x16x4xf32> to vector<8x16x4xf32>
    %6 = vector.shape_cast %5 : vector<8x16x4xf32> to vector<128x4xf32>
    %c0_2 = arith.constant 0 : index
    %c0_3 = arith.constant 0 : index
    %c0_4 = arith.constant 0 : index
    %c0_5 = arith.constant 0 : index
    %7 = vector.load %arg3[%c0_2, %c0_3, %c0_4, %c0_5] : memref<3x3x4x128xf32, #tpu.memory_space<vmem>>, vector<1x1x4x128xf32>
    %8 = vector.shape_cast %7 : vector<1x1x4x128xf32> to vector<4x128xf32>
    %cst_6 = arith.constant dense<0.000000e+00> : vector<128x128xf32>
    %9 = tpu.matmul %6, %8, %cst_6 {dimension_numbers = #tpu.dot_dimension_numbers<[1], [0], [0], [1], [0, 0, 1, 1], [], []>} : vector<128x4xf32>, vector<4x128xf32>, vector<128x128xf32> -> vector<128x128xf32>
    %10 = arith.addf %1, %9 : vector<128x128xf32>
    %c0_i32_7 = arith.constant 0 : i32
    %11 = arith.addi %0, %c0_i32_7 : i32
    %c0_8 = arith.constant 0 : index
    %12 = arith.index_cast %11 : i32 to index
    %c1 = arith.constant 1 : index
    %c0_9 = arith.constant 0 : index
    %13 = vector.load %arg2[%c0_8, %12, %c1, %c0_9] : memref<1x18x18x4xf32, #tpu.memory_space<vmem>>, vector<1x8x16x4xf32>
    %14 = vector.shape_cast %13 : vector<1x8x16x4xf32> to vector<8x16x4xf32>
    %15 = vector.shape_cast %14 : vector<8x16x4xf32> to vector<128x4xf32>
    %c0_10 = arith.constant 0 : index
    %c1_11 = arith.constant 1 : index
    %c0_12 = arith.constant 0 : index
    %c0_13 = arith.constant 0 : index
    %16 = vector.load %arg3[%c0_10, %c1_11, %c0_12, %c0_13] : memref<3x3x4x128xf32, #tpu.memory_space<vmem>>, vector<1x1x4x128xf32>
    %17 = vector.shape_cast %16 : vector<1x1x4x128xf32> to vector<4x128xf32>
    %cst_14 = arith.constant dense<0.000000e+00> : vector<128x128xf32>
    %18 = tpu.matmul %15, %17, %cst_14 {dimension_numbers = #tpu.dot_dimension_numbers<[1], [0], [0], [1], [0, 0, 1, 1], [], []>} : vector<128x4xf32>, vector<4x128xf32>, vector<128x128xf32> -> vector<128x128xf32>
    %19 = arith.addf %10, %18 : vector<128x128xf32>
    %c0_i32_15 = arith.constant 0 : i32
    %20 = arith.addi %0, %c0_i32_15 : i32
    %c0_16 = arith.constant 0 : index
    %21 = arith.index_cast %20 : i32 to index
    %c2 = arith.constant 2 : index
    %c0_17 = arith.constant 0 : index
    %22 = vector.load %arg2[%c0_16, %21, %c2, %c0_17] : memref<1x18x18x4xf32, #tpu.memory_space<vmem>>, vector<1x8x16x4xf32>
    %23 = vector.shape_cast %22 : vector<1x8x16x4xf32> to vector<8x16x4xf32>
    %24 = vector.shape_cast %23 : vector<8x16x4xf32> to vector<128x4xf32>
    %c0_18 = arith.constant 0 : index
    %c2_19 = arith.constant 2 : index
    %c0_20 = arith.constant 0 : index
    %c0_21 = arith.constant 0 : index
    %25 = vector.load %arg3[%c0_18, %c2_19, %c0_20, %c0_21] : memref<3x3x4x128xf32, #tpu.memory_space<vmem>>, vector<1x1x4x128xf32>
    %26 = vector.shape_cast %25 : vector<1x1x4x128xf32> to vector<4x128xf32>
    %cst_22 = arith.constant dense<0.000000e+00> : vector<128x128xf32>
    %27 = tpu.matmul %24, %26, %cst_22 {dimension_numbers = #tpu.dot_dimension_numbers<[1], [0], [0], [1], [0, 0, 1, 1], [], []>} : vector<128x4xf32>, vector<4x128xf32>, vector<128x128xf32> -> vector<128x128xf32>
    %28 = arith.addf %19, %27 : vector<128x128xf32>
    %c1_i32 = arith.constant 1 : i32
    %29 = arith.addi %0, %c1_i32 : i32
    %c0_23 = arith.constant 0 : index
    %30 = arith.index_cast %29 : i32 to index
    %c0_24 = arith.constant 0 : index
    %c0_25 = arith.constant 0 : index
    %31 = vector.load %arg2[%c0_23, %30, %c0_24, %c0_25] : memref<1x18x18x4xf32, #tpu.memory_space<vmem>>, vector<1x8x16x4xf32>
    %32 = vector.shape_cast %31 : vector<1x8x16x4xf32> to vector<8x16x4xf32>
    %33 = vector.shape_cast %32 : vector<8x16x4xf32> to vector<128x4xf32>
    %c1_26 = arith.constant 1 : index
    %c0_27 = arith.constant 0 : index
    %c0_28 = arith.constant 0 : index
    %c0_29 = arith.constant 0 : index
    %34 = vector.load %arg3[%c1_26, %c0_27, %c0_28, %c0_29] : memref<3x3x4x128xf32, #tpu.memory_space<vmem>>, vector<1x1x4x128xf32>
    %35 = vector.shape_cast %34 : vector<1x1x4x128xf32> to vector<4x128xf32>
    %cst_30 = arith.constant dense<0.000000e+00> : vector<128x128xf32>
    %36 = tpu.matmul %33, %35, %cst_30 {dimension_numbers = #tpu.dot_dimension_numbers<[1], [0], [0], [1], [0, 0, 1, 1], [], []>} : vector<128x4xf32>, vector<4x128xf32>, vector<128x128xf32> -> vector<128x128xf32>
    %37 = arith.addf %28, %36 : vector<128x128xf32>
    %c1_i32_31 = arith.constant 1 : i32
    %38 = arith.addi %0, %c1_i32_31 : i32
    %c0_32 = arith.constant 0 : index
    %39 = arith.index_cast %38 : i32 to index
    %c1_33 = arith.constant 1 : index
    %c0_34 = arith.constant 0 : index
    %40 = vector.load %arg2[%c0_32, %39, %c1_33, %c0_34] : memref<1x18x18x4xf32, #tpu.memory_space<vmem>>, vector<1x8x16x4xf32>
    %41 = vector.shape_cast %40 : vector<1x8x16x4xf32> to vector<8x16x4xf32>
    %42 = vector.shape_cast %41 : vector<8x16x4xf32> to vector<128x4xf32>
    %c1_35 = arith.constant 1 : index
    %c1_36 = arith.constant 1 : index
    %c0_37 = arith.constant 0 : index
    %c0_38 = arith.constant 0 : index
    %43 = vector.load %arg3[%c1_35, %c1_36, %c0_37, %c0_38] : memref<3x3x4x128xf32, #tpu.memory_space<vmem>>, vector<1x1x4x128xf32>
    %44 = vector.shape_cast %43 : vector<1x1x4x128xf32> to vector<4x128xf32>
    %cst_39 = arith.constant dense<0.000000e+00> : vector<128x128xf32>
    %45 = tpu.matmul %42, %44, %cst_39 {dimension_numbers = #tpu.dot_dimension_numbers<[1], [0], [0], [1], [0, 0, 1, 1], [], []>} : vector<128x4xf32>, vector<4x128xf32>, vector<128x128xf32> -> vector<128x128xf32>
    %46 = arith.addf %37, %45 : vector<128x128xf32>
    %c1_i32_40 = arith.constant 1 : i32
    %47 = arith.addi %0, %c1_i32_40 : i32
    %c0_41 = arith.constant 0 : index
    %48 = arith.index_cast %47 : i32 to index
    %c2_42 = arith.constant 2 : index
    %c0_43 = arith.constant 0 : index
    %49 = vector.load %arg2[%c0_41, %48, %c2_42, %c0_43] : memref<1x18x18x4xf32, #tpu.memory_space<vmem>>, vector<1x8x16x4xf32>
    %50 = vector.shape_cast %49 : vector<1x8x16x4xf32> to vector<8x16x4xf32>
    %51 = vector.shape_cast %50 : vector<8x16x4xf32> to vector<128x4xf32>
    %c1_44 = arith.constant 1 : index
    %c2_45 = arith.constant 2 : index
    %c0_46 = arith.constant 0 : index
    %c0_47 = arith.constant 0 : index
    %52 = vector.load %arg3[%c1_44, %c2_45, %c0_46, %c0_47] : memref<3x3x4x128xf32, #tpu.memory_space<vmem>>, vector<1x1x4x128xf32>
    %53 = vector.shape_cast %52 : vector<1x1x4x128xf32> to vector<4x128xf32>
    %cst_48 = arith.constant dense<0.000000e+00> : vector<128x128xf32>
    %54 = tpu.matmul %51, %53, %cst_48 {dimension_numbers = #tpu.dot_dimension_numbers<[1], [0], [0], [1], [0, 0, 1, 1], [], []>} : vector<128x4xf32>, vector<4x128xf32>, vector<128x128xf32> -> vector<128x128xf32>
    %55 = arith.addf %46, %54 : vector<128x128xf32>
    %c2_i32 = arith.constant 2 : i32
    %56 = arith.addi %0, %c2_i32 : i32
    %c0_49 = arith.constant 0 : index
    %57 = arith.index_cast %56 : i32 to index
    %c0_50 = arith.constant 0 : index
    %c0_51 = arith.constant 0 : index
    %58 = vector.load %arg2[%c0_49, %57, %c0_50, %c0_51] : memref<1x18x18x4xf32, #tpu.memory_space<vmem>>, vector<1x8x16x4xf32>
    %59 = vector.shape_cast %58 : vector<1x8x16x4xf32> to vector<8x16x4xf32>
    %60 = vector.shape_cast %59 : vector<8x16x4xf32> to vector<128x4xf32>
    %c2_52 = arith.constant 2 : index
    %c0_53 = arith.constant 0 : index
    %c0_54 = arith.constant 0 : index
    %c0_55 = arith.constant 0 : index
    %61 = vector.load %arg3[%c2_52, %c0_53, %c0_54, %c0_55] : memref<3x3x4x128xf32, #tpu.memory_space<vmem>>, vector<1x1x4x128xf32>
    %62 = vector.shape_cast %61 : vector<1x1x4x128xf32> to vector<4x128xf32>
    %cst_56 = arith.constant dense<0.000000e+00> : vector<128x128xf32>
    %63 = tpu.matmul %60, %62, %cst_56 {dimension_numbers = #tpu.dot_dimension_numbers<[1], [0], [0], [1], [0, 0, 1, 1], [], []>} : vector<128x4xf32>, vector<4x128xf32>, vector<128x128xf32> -> vector<128x128xf32>
    %64 = arith.addf %55, %63 : vector<128x128xf32>
    %c2_i32_57 = arith.constant 2 : i32
    %65 = arith.addi %0, %c2_i32_57 : i32
    %c0_58 = arith.constant 0 : index
    %66 = arith.index_cast %65 : i32 to index
    %c1_59 = arith.constant 1 : index
    %c0_60 = arith.constant 0 : index
    %67 = vector.load %arg2[%c0_58, %66, %c1_59, %c0_60] : memref<1x18x18x4xf32, #tpu.memory_space<vmem>>, vector<1x8x16x4xf32>
    %68 = vector.shape_cast %67 : vector<1x8x16x4xf32> to vector<8x16x4xf32>
    %69 = vector.shape_cast %68 : vector<8x16x4xf32> to vector<128x4xf32>
    %c2_61 = arith.constant 2 : index
    %c1_62 = arith.constant 1 : index
    %c0_63 = arith.constant 0 : index
    %c0_64 = arith.constant 0 : index
    %70 = vector.load %arg3[%c2_61, %c1_62, %c0_63, %c0_64] : memref<3x3x4x128xf32, #tpu.memory_space<vmem>>, vector<1x1x4x128xf32>
    %71 = vector.shape_cast %70 : vector<1x1x4x128xf32> to vector<4x128xf32>
    %cst_65 = arith.constant dense<0.000000e+00> : vector<128x128xf32>
    %72 = tpu.matmul %69, %71, %cst_65 {dimension_numbers = #tpu.dot_dimension_numbers<[1], [0], [0], [1], [0, 0, 1, 1], [], []>} : vector<128x4xf32>, vector<4x128xf32>, vector<128x128xf32> -> vector<128x128xf32>
    %73 = arith.addf %64, %72 : vector<128x128xf32>
    %c2_i32_66 = arith.constant 2 : i32
    %74 = arith.addi %0, %c2_i32_66 : i32
    %c0_67 = arith.constant 0 : index
    %75 = arith.index_cast %74 : i32 to index
    %c2_68 = arith.constant 2 : index
    %c0_69 = arith.constant 0 : index
    %76 = vector.load %arg2[%c0_67, %75, %c2_68, %c0_69] : memref<1x18x18x4xf32, #tpu.memory_space<vmem>>, vector<1x8x16x4xf32>
    %77 = vector.shape_cast %76 : vector<1x8x16x4xf32> to vector<8x16x4xf32>
    %78 = vector.shape_cast %77 : vector<8x16x4xf32> to vector<128x4xf32>
    %c2_70 = arith.constant 2 : index
    %c2_71 = arith.constant 2 : index
    %c0_72 = arith.constant 0 : index
    %c0_73 = arith.constant 0 : index
    %79 = vector.load %arg3[%c2_70, %c2_71, %c0_72, %c0_73] : memref<3x3x4x128xf32, #tpu.memory_space<vmem>>, vector<1x1x4x128xf32>
    %80 = vector.shape_cast %79 : vector<1x1x4x128xf32> to vector<4x128xf32>
    %cst_74 = arith.constant dense<0.000000e+00> : vector<128x128xf32>
    %81 = tpu.matmul %78, %80, %cst_74 {dimension_numbers = #tpu.dot_dimension_numbers<[1], [0], [0], [1], [0, 0, 1, 1], [], []>} : vector<128x4xf32>, vector<4x128xf32>, vector<128x128xf32> -> vector<128x128xf32>
    %82 = arith.addf %73, %81 : vector<128x128xf32>
    %c0_75 = arith.constant 0 : index
    %c0_76 = arith.constant 0 : index
    %83 = vector.load %arg4[%c0_75, %c0_76] : memref<1x128xf32, #tpu.memory_space<vmem>>, vector<1x128xf32>
    %84 = vector.broadcast %83 : vector<1x128xf32> to vector<128x128xf32>
    %85 = arith.mulf %82, %84 : vector<128x128xf32>
    %c0_77 = arith.constant 0 : index
    %c0_78 = arith.constant 0 : index
    %86 = vector.load %arg5[%c0_77, %c0_78] : memref<1x128xf32, #tpu.memory_space<vmem>>, vector<1x128xf32>
    %87 = vector.broadcast %86 : vector<1x128xf32> to vector<128x128xf32>
    %88 = arith.addf %85, %87 : vector<128x128xf32>
    %cst_79 = arith.constant 0.000000e+00 : f32
    %89 = vector.broadcast %cst_79 : f32 to vector<128x128xf32>
    %90 = arith.maximumf %88, %89 : vector<128x128xf32>
    %91 = vector.shape_cast %90 : vector<128x128xf32> to vector<1x8x16x128xf32>
    %c0_80 = arith.constant 0 : index
    %c0_81 = arith.constant 0 : index
    %c0_82 = arith.constant 0 : index
    %c0_83 = arith.constant 0 : index
    %92 = vector.load %arg6[%c0_80, %c0_81, %c0_82, %c0_83] : memref<1x8x16x128xf32, #tpu.memory_space<vmem>>, vector<1x8x16x128xf32>
    tpu.vector_store %arg6[%c0_80, %c0_81, %c0_82, %c0_83], %91 {strides = array<i32>} : memref<1x8x16x128xf32, #tpu.memory_space<vmem>>, vector<1x8x16x128xf32>,
    return
  }
  func.func @transform_0(%arg0: i32, %arg1: i32) -> (i32, i32, i32, i32) {
    %c0_i32 = arith.constant 0 : i32
    %c0_i32_0 = arith.constant 0 : i32
    %c0_i32_1 = arith.constant 0 : i32
    %c0_i32_2 = arith.constant 0 : i32
    return %arg0, %c0_i32, %c0_i32_0, %c0_i32_1 : i32, i32, i32, i32
  }
  func.func @transform_1(%arg0: i32, %arg1: i32) -> (i32, i32, i32, i32) {
    %c0_i32 = arith.constant 0 : i32
    %c0_i32_0 = arith.constant 0 : i32
    %c0_i32_1 = arith.constant 0 : i32
    %c0_i32_2 = arith.constant 0 : i32
    %c0_i32_3 = arith.constant 0 : i32
    return %c0_i32, %c0_i32_0, %c0_i32_1, %c0_i32_2 : i32, i32, i32, i32
  }
  func.func @transform_2(%arg0: i32, %arg1: i32) -> (i32, i32) {
    %c0_i32 = arith.constant 0 : i32
    %c0_i32_0 = arith.constant 0 : i32
    %c0_i32_1 = arith.constant 0 : i32
    return %c0_i32, %c0_i32_0 : i32, i32
  }
  func.func @transform_3(%arg0: i32, %arg1: i32) -> (i32, i32) {
    %c0_i32 = arith.constant 0 : i32
    %c0_i32_0 = arith.constant 0 : i32
    %c0_i32_1 = arith.constant 0 : i32
    return %c0_i32, %c0_i32_0 : i32, i32
  }
  func.func @transform_4(%arg0: i32, %arg1: i32) -> (i32, i32, i32, i32) {
    %c0_i32 = arith.constant 0 : i32
    %c0_i32_0 = arith.constant 0 : i32
    %c0_i32_1 = arith.constant 0 : i32
    return %arg0, %arg1, %c0_i32, %c0_i32_0 : i32, i32, i32, i32
  }
}

</mosaic_0001>

<bundles_post_ra>
// kernel: tpu_custom_call.1
= control target key start
LH: loop header
LB: loop body
LE: loop exit
PB: predicated region body
PF: predicated region fallthrough
CT: control target
= control target key end

     0   :  { %9 = vsyncpa [#allocation3], 0  ;;  %s4114_s0 = inlined_call_operand.vmem [shape: f32[2,18,18,4], index: 0, kind: input, shape index: {}]   ;;  %s4115_s1 = inlined_call_operand.vmem [shape: f32[3,3,4,128], index: 1, kind: input, shape index: {}]   ;;  %s4116_s2 = inlined_call_operand.vmem [shape: f32[1,128], index: 2, kind: input, shape index: {}]   ;;  %s4117_s3 = inlined_call_operand.vmem [shape: f32[1,128], index: 3, kind: input, shape index: {}]   ;;  %s4118_s4 = inlined_call_operand.hbm [shape: f32[2,16,16,128], index: 4, kind: output, shape index: {}]  }
   0x1   :  { %11 = vsyncpa [#allocation3 + $0x1], 0  ;;  %s3435_s15 = smov 0   ;;  %s3437_s16 = smov 0  }
   0x2   :  { %s3439_s17 = smov 0   ;;  %s3441_s18 = smov 0  }
   0x3   :  { %s3443_s19 = smov 0   ;;  %s3445_s20 = smov 0  }
   0x4   :  { %s3447_s21 = smov 0   ;;  %s3449_s22 = smov 0  }
   0x5 LB: > { %s2440_s23 = sadd.s32 4294967295, %s3405_s22   ;;  %s2441_s24 = sadd.s32 4294967294, %s3405_s22   ;;  %s3405_s22 = sphi %s3449_s22, %s17_s22   ;;  %s3401_s21 = sphi %s3447_s21, %s4127_s21   ;;  %s3397_s20 = sphi %s3445_s20, %s4126_s20   ;;  %s3393_s19 = sphi %s3443_s19, %s4125_s19   ;;  %s3389_s18 = sphi %s3441_s18, %s4124_s18   ;;  %s3385_s17 = sphi %s3439_s17, %s4123_s17   ;;  %s3381_s16 = sphi %s3437_s16, %s4122_s16   ;;  %s3377_s15 = sphi %s3435_s15, %s4121_s15  }
   0x6   : > { %s26_s25 = sadd.s32 1, %s3397_s20  ;;  %s29_s26 = sadd.s32 1, %s3401_s21 }
   0x7   : > { %p27_p0 = scmp.ge.s32.totalorder %s26_s25, 2  ;;  %p137_p1 = scmp.ne.s32.totalorder %s3385_s17, %s3381_s16 }
   0x8   : > { %p138_p2 = scmp.eq.s32.totalorder %s2440_s23, 3  ;;  %p143_p5 = scmp.ne.s32.totalorder %s3381_s16, %s3377_s15 }
   0x9   : > { %s4129_s25 = smov (%p27_p0, %s26_s25), 0  ;;  %s4131_s26 = smov (!%p27_p0, %s29_s26), %s3401_s21 }
   0xa   : > { %s123_s27 = ssub.s32 %s3397_s20, %s4129_s25  ;;  %p3486_p3 = por %p138_p2, %p137_p1 }
   0xb   : > { %p31_p4 = scmp.ge.s32.totalorder %s4131_s26, 2  ;;  %p144_p6 = scmp.eq.s32.totalorder %s2441_s24, 3 }
   0xc   : > { %p2444_p7 = scmp.ge.s32.totalorder %s3405_s22, 1  ;;  %p179_p9 = scmp.lt.s32.totalorder %s3405_s22, 5 }
   0xd   : > { %s4133_s26 = smov (%p31_p4, %s4131_s26), 0  ;;  %p3495_p8 = por %p144_p6, %p143_p5 }
   0xe   : > { %s122_s30 = ssub.s32 %s3401_s21, %s4133_s26  ;;  %s127_s5 = sadd.s32 1, %s3385_s17 }
   0xf   : > { %s124_s6 = sor.u32 %s123_s27, %s122_s30  ;;  %p180_p10 = pnand %p2444_p7, %p179_p9 }
  0x10   : > { %p125_p11 = scmp.eq.s32.totalorder %s124_s6, 0  ;;  %v2449_v0 = vld [vmem:[%s4115_s1 + $0x4] sm:$0xf] (!%p180_p10)  ;;  %vm298_vm0 = vcmask (!%p180_p10), 1043456   ;;  %v3512_v1 = vld [vmem:[%s4115_s1 + $0x10] sm:$0xf] (!%p180_p10) }
  0x11   : > { %183 = sbr.rel (%p180_p10) target bundleno = 408 (0x198), region = 36  ;;  %p205_p12 = scmp.lt.s32.totalorder (!%p180_p10), %s3393_s19, 1  ;;  %2873 = vmatprep.subr.msk.mxu1 (!%p180_p10), %vm298_vm0, %v2449_v0  ;;  %2977 = vmatprep.subr.msk.mxu0 (!%p180_p10), %vm298_vm0, %v3512_v1  ;;  %v230_v2 = vld [vmem:[%s4115_s1] sm:$0xf] (!%p180_p10)  ;;  %v2588_v3 = vld [vmem:[%s4115_s1 + $0x14] sm:$0xf] (!%p180_p10) }
  0x12   : > { %s3504_s7 = scalar_select %p125_p11, %s3385_s17, %s127_s5  }
  0x13   : > { %2874 = vmatpush3.msk.msra.mxu1 (!%p180_p10), %vm298_vm0, %v2449_v0  ;;  %2978 = vmatpush3.msk.msra.mxu0 (!%p180_p10), %vm298_vm0, %v3512_v1  ;;  %s2448_s27 = smul.u32 (!%p180_p10), 192, %s3389_s18  ;;  %vm249_vm1 = vcmask (!%p180_p10), 31744   ;;  %v2624_v9 = vld [vmem:[%s4115_s1 + $0x18] sm:$0xf] (!%p180_p10)  ;;  %v3553_v10 = vld [vmem:[%s4115_s1 + $0x8] sm:$0xf] (!%p180_p10) }
  0x14   : > { %2899 = vmatprep.subr.msk.mxu1 (!%p180_p10), %vm298_vm0, %v230_v2  ;;  %3003 = vmatprep.subr.msk.mxu0 (!%p180_p10), %vm298_vm0, %v2588_v3  ;;  %v3616_v20 = vld [vmem:[%s4115_s1 + $0x1c] sm:$0xf] (!%p180_p10)  ;;  %v2520_v37 = vld [vmem:[%s4115_s1 + $0xc] sm:$0xf] (!%p180_p10)  ;;  %v2692_v51 = vld [vmem:[%s4115_s1 + $0x20] sm:$0xf] (!%p180_p10) }
  0x15   : > { %s202_s6 = sand.u32 (!%p180_p10), 1, %s3381_s16   ;;  %s2719_s14 = sshll.u32 (!%p180_p10), %s3389_s18, 4 }
  0x16   : > { %s2445_s12 = sshll.u32 (!%p180_p10), %s202_s6, 7  ;;  %s2715_s23 = sshll.u32 (!%p180_p10), %s3393_s19, 5 }
  0x17   : > { %s4006_s13 = scalar_lea.vmem (!%p180_p10), [#allocation2], %s2445_s12 }
  0x18   : > { %s206_s24 = scalar_select %p205_p12, %s3393_s19, 1 }
  0x19   : > { %s2354_s19 = sshll.u32 %s4006_s13, 4  ;;  %s4056_s19 = int_to_ptr.vmem [resolvable:$true] %s2354_s19 }
  0x1a   : > { %s3237_s30 = smul.u32 432, %s206_s24  ;;  %s2351_s24 = sadd.s32 %s2719_s14, %s2715_s23 }
  0x1b   : > { %s2716_s18 = sshll.u32 %s2351_s24, 7  ;;  %s3311_s10 = scalar_lea.vmem %s4056_s19, 2048 }
  0x1c   : > { %s209_s8 = scalar_lea.vmem %s4114_s0, %s3237_s30  ;;  %s4054_s5 = scalar_lea.hbm %s4118_s4, %s2716_s18 }
  0x1d   : > { %s3534_s9 = scalar_lea.vmem %s209_s8, %s2448_s27  ;;  %s4062_s8 = scalar_lea.sflag [#allocation3], %s202_s6 }
  0x1e   : > { %v231_v4 = vld [vmem:[%s3534_s9 + $0x1] sm:$0xff]  ;;  %v2538_v5 = vld [vmem:[%s3534_s9 + $0x19] sm:$0xff]  ;;  %v232_v6 = vld [vmem:[%s3534_s9 + $0x9] sm:$0xff]  ;;  %p3312_p13 = scmp.ne.s32.totalorder %s4056_s19, %s3311_s10 }
  0x1f   : > { %2875 = vmatprep.mubr.msk.f32.mxu1 %vm249_vm1, %v231_v4  ;;  %2979 = vmatprep.mubr.msk.f32.mxu0 %vm249_vm1, %v2538_v5  ;;  %v2539_v7 = vld [vmem:[%s3534_s9 + $0x21] sm:$0xff]  ;;  %v3543_v8 = vld [vmem:[%s3534_s9 + $0x31] sm:$0xff]  ;;  %v3558_v11 = vld [vmem:[%s3534_s9 + $0x39] sm:$0xff] }
  0x20   : > { %2876 = vmatmul.mubr.msk.f32.vlgmr.msra.gmra.mrb[0].mxu1 %vm249_vm1, %v232_v6  ;;  %2980 = vmatmul.mubr.msk.f32.vlgmr.msra.gmra.mrb[0].mxu0 %vm249_vm1, %v2539_v7  ;;  %v3564_v12 = vld [vmem:[%s3534_s9 + $0x49] sm:$0xff]  ;;  %v3577_v13 = vld [vmem:[%s3534_s9 + $0x51] sm:$0xff]  ;;  %v3580_v14 = vld [vmem:[%s3534_s9 + $0x61] sm:$0xff]  ;;  %p3313_p0 = pnand %p3312_p13, %p3486_p3 }
  0x21   : > { %2900 = vmatpush3.msk.msra.mxu1 %vm298_vm0, %v230_v2  ;;  %3004 = vmatpush3.msk.msra.mxu0 %vm298_vm0, %v2588_v3  ;;  %v3591_v15 = vld [vmem:[%s3534_s9 + $0x69] sm:$0xff]  ;;  %v3594_v16 = vld [vmem:[%s3534_s9 + $0x1a] sm:$0xff]  ;;  %v3611_v19 = vld [vmem:[%s3534_s9 + $0x32] sm:$0xff] }
  0x22   : > { %2878 = vmatprep.mubr.msk.f32.mxu1 %vm249_vm1, %v2538_v5  ;;  %2982 = vmatprep.mubr.msk.f32.mxu0 %vm249_vm1, %v3543_v8  ;;  %v3605_v17 = vld [vmem:[%s3534_s9 + $0x22] sm:$0xff]  ;;  %v3608_v18 = vld [vmem:[%s3534_s9 + $0x79] sm:$0xff]  ;;  %v3634_v23 = vld [vmem:[%s3534_s9 + $0x91] sm:$0xff]  ;;  %p3314_p1 = pneg %p3313_p0 }
  0x23   : > { %3029 = vmatprep.subr.msk.mxu0 %vm298_vm0, %v2624_v9  ;;  %2925 = vmatprep.subr.msk.mxu1 %vm298_vm0, %v3553_v10  ;;  %v3626_v21 = vld [vmem:[%s3534_s9 + $0x81] sm:$0xff]  ;;  %v3637_v24 = vld [vmem:[%s3534_s9 + $0x4a] sm:$0xff]  ;;  %v3650_v25 = vld [vmem:[%s3534_s9 + $0x99] sm:$0xff] }
  0x24   : > { %2879 = vmatmul.mubr.msk.f32.gmra.mrb[2].mxu1 %vm249_vm1, %v2539_v7  ;;  %2983 = vmatmul.mubr.msk.f32.gmra.mrb[2].mxu0 %vm249_vm1, %v3558_v11  ;;  %v3629_v22 = vld [vmem:[%s3534_s9 + $0x3a] sm:$0xff]  ;;  %v3653_v26 = vld [vmem:[%s3534_s9 + $0x52] sm:$0xff]  ;;  %v3656_v27 = vld [vmem:[%s3534_s9 + $0xa9] sm:$0xff] }
  0x25   : > { %2881 = vmatprep.mubr.msk.f32.mxu1 %vm249_vm1, %v3543_v8  ;;  %2985 = vmatprep.mubr.msk.f32.mxu0 %vm249_vm1, %v3564_v12  ;;  %v3659_v28 = vld [vmem:[%s3534_s9 + $0x62] sm:$0xff]  ;;  %v3670_v29 = vld [vmem:[%s3534_s9 + $0xb1] sm:$0xff]  ;;  %v3677_v32 = vld [vmem:[%s3534_s9 + $0x7a] sm:$0xff] }
  0x26   : > { %v3673_v30 = vld [vmem:[%s3534_s9 + $0x6a] sm:$0xff]  ;;  %v214_v31 = vld [vmem:[%s3534_s9] sm:$0xff]  ;;  %v3691_v35 = vld [vmem:[%s3534_s9 + $0x18] sm:$0xff] }
  0x27   : > { %v215_v33 = vld [vmem:[%s3534_s9 + $0x8] sm:$0xff]  ;;  %v3694_v36 = vld [vmem:[%s3534_s9 + $0x92] sm:$0xff]  ;;  %v3707_v38 = vld [vmem:[%s3534_s9 + $0x20] sm:$0xff] }
  0x28   : > { %2882 = vmatmul.mubr.msk.f32.gmra.mrb[4].mxu1 %vm249_vm1, %v3558_v11  ;;  %2986 = vmatmul.mubr.msk.f32.gmra.mrb[4].mxu0 %vm249_vm1, %v3577_v13  ;;  %v3688_v34 = vld [vmem:[%s3534_s9 + $0x82] sm:$0xff]  ;;  %v3710_v39 = vld [vmem:[%s3534_s9 + $0x9a] sm:$0xff]  ;;  %v3715_v40 = vld [vmem:[%s3534_s9 + $0x30] sm:$0xff] }
  0x29   : > { %2884 = vmatprep.mubr.msk.f32.mxu1 %vm249_vm1, %v3564_v12  ;;  %2988 = vmatprep.mubr.msk.f32.mxu0 %vm249_vm1, %v3580_v14  ;;  %v3718_v41 = vld [vmem:[%s3534_s9 + $0xaa] sm:$0xff]  ;;  %v3730_v42 = vld [vmem:[%s3534_s9 + $0x38] sm:$0xff]  ;;  %v3739_v45 = vld [vmem:[%s3534_s9 + $0xc2] sm:$0xff] }
  0x2a   : > { %v3733_v43 = vld [vmem:[%s3534_s9 + $0xb2] sm:$0xff]  ;;  %v3736_v44 = vld [vmem:[%s3534_s9 + $0x48] sm:$0xff]  ;;  %v3756_v48 = vld [vmem:[%s3534_s9 + $0x60] sm:$0xff] }
  0x2b   : > { %v3750_v46 = vld [vmem:[%s3534_s9 + $0x50] sm:$0xff]  ;;  %v3767_v49 = vld [vmem:[%s3534_s9 + $0x68] sm:$0xff]  ;;  %v3770_v50 = vld [vmem:[%s3534_s9 + $0x78] sm:$0xff] }
  0x2c   : > { %2885 = vmatmul.mubr.msk.f32.gmra.mrb[6].mxu1 %vm249_vm1, %v3577_v13  ;;  %2989 = vmatmul.mubr.msk.f32.gmra.mrb[6].mxu0 %vm249_vm1, %v3591_v15  ;;  %v3753_v47 = vld [vmem:[%s3534_s9 + $0xca] sm:$0xff]  ;;  %v3784_v52 = vld [vmem:[%s3534_s9 + $0x80] sm:$0xff]  ;;  %v3801_v54 = vld [vmem:[%s3534_s9 + $0x98] sm:$0xff] }
  0x2d   : > { %2887 = vmatprep.mubr.msk.f32.mxu1 %vm249_vm1, %v3580_v14  ;;  %3005 = vmatprep.mubr.msk.f32.mxu0 %vm249_vm1, %v3594_v16  ;;  %v3789_v53 = vld [vmem:[%s3534_s9 + $0x90] sm:$0xff]  ;;  %v3804_v55 = vld [vmem:[%s3534_s9 + $0xa8] sm:$0xff]  ;;  %v3835_v59 = vld [vmem:[%s3534_s9 + $0xc0] sm:$0xff] }
  0x2e   : > { %v3815_v56 = vld [vmem:[%s3534_s9 + $0xb0] sm:$0xff]  ;;  %v643_v57 = vld [vmem:[%s3534_s9 + $0x2] sm:$0xff]  ;;  %v2622_v61 = vld [vmem:[%s3534_s9 + $0xd8] sm:$0xff] }
  0x2f   : > { %v644_v58 = vld [vmem:[%s3534_s9 + $0xa] sm:$0xff]  ;;  %v2623_v62 = vld [vmem:[%s3534_s9 + $0xe0] sm:$0xff] }
  0x30   : > { %2888 = vmatmul.mubr.msk.f32.gmra.mrb[8].mxu1 %vm249_vm1, %v3591_v15  ;;  %3006 = vmatmul.mubr.msk.f32.vlgmr.msra.gmra.mrb[0].mxu0 %vm249_vm1, %v3605_v17  ;;  %v2621_v60 = vld [vmem:[%s3534_s9 + $0xc8] sm:$0xff]  ;;  %v2690_v3 = vld [vmem:[%s3534_s9 + $0xda] sm:$0xff] }
  0x31   : > { %3030 = vmatpush3.msk.msra.mxu0 %vm298_vm0, %v2624_v9  ;;  %2890 = vmatprep.mubr.msk.f32.mxu1 %vm249_vm1, %v3608_v18  ;;  %v2654_v63 = vld [vmem:[%s3534_s9 + $0xc1] sm:$0xff]  ;;  %v2655_v0 = vld [vmem:[%s3534_s9 + $0xc9] sm:$0xff] }
  0x32   : > { %3008 = vmatprep.mubr.msk.f32.mxu0 %vm249_vm1, %v3611_v19  ;;  %3055 = vmatprep.subr.msk.mxu0 %vm298_vm0, %v3616_v20  ;;  %v2657_v2 = vld [vmem:[%s3534_s9 + $0xe1] sm:$0xff] }
  0x33   : > { %v2691_v4 = vld [vmem:[%s3534_s9 + $0xe2] sm:$0xff] }
  0x34   : > { %2891 = vmatmul.mubr.msk.f32.gmra.mrb[10].mxu1 %vm249_vm1, %v3626_v21  ;;  %3009 = vmatmul.mubr.msk.f32.gmra.mrb[2].mxu0 %vm249_vm1, %v3629_v22 }
  0x35   : > { %2893 = vmatprep.mubr.msk.f32.mxu1 %vm249_vm1, %v3634_v23  ;;  %3011 = vmatprep.mubr.msk.f32.mxu0 %vm249_vm1, %v3637_v24 }
  0x38   : > { %2894 = vmatmul.mubr.msk.f32.gmra.mrb[12].mxu1 %vm249_vm1, %v3650_v25  ;;  %3012 = vmatmul.mubr.msk.f32.gmra.mrb[4].mxu0 %vm249_vm1, %v3653_v26 }
  0x39   : > { %2896 = vmatprep.mubr.msk.f32.mxu1 %vm249_vm1, %v3656_v27  ;;  %3014 = vmatprep.mubr.msk.f32.mxu0 %vm249_vm1, %v3659_v28 }
  0x3c   : > { %2897 = vmatmul.mubr.msk.f32.gmra.mrb[14].mxu1 %vm249_vm1, %v3670_v29  ;;  %3015 = vmatmul.mubr.msk.f32.gmra.mrb[6].mxu0 %vm249_vm1, %v3673_v30 }
  0x3d   : > { %2901 = vmatprep.mubr.msk.f32.mxu1 %vm249_vm1, %v214_v31  ;;  %3017 = vmatprep.mubr.msk.f32.mxu0 %vm249_vm1, %v3677_v32 }
  0x40   : > { %2902 = vmatmul.mubr.msk.f32.vlgmr.msra.gmra.mrb[0].mxu1 %vm249_vm1, %v215_v33  ;;  %3018 = vmatmul.mubr.msk.f32.gmra.mrb[8].mxu0 %vm249_vm1, %v3688_v34 }
  0x41   : > { %2926 = vmatpush3.msk.msra.mxu1 %vm298_vm0, %v3553_v10  ;;  %2904 = vmatprep.mubr.msk.f32.mxu1 %vm249_vm1, %v3691_v35 }
  0x42   : > { %3020 = vmatprep.mubr.msk.f32.mxu0 %vm249_vm1, %v3694_v36  ;;  %2951 = vmatprep.subr.msk.mxu1 %vm298_vm0, %v2520_v37 }
  0x44   : > { %2905 = vmatmul.mubr.msk.f32.gmra.mrb[2].mxu1 %vm249_vm1, %v3707_v38  ;;  %3021 = vmatmul.mubr.msk.f32.gmra.mrb[10].mxu0 %vm249_vm1, %v3710_v39 }
  0x45   : > { %2907 = vmatprep.mubr.msk.f32.mxu1 %vm249_vm1, %v3715_v40  ;;  %3023 = vmatprep.mubr.msk.f32.mxu0 %vm249_vm1, %v3718_v41 }
  0x48   : > { %2908 = vmatmul.mubr.msk.f32.gmra.mrb[4].mxu1 %vm249_vm1, %v3730_v42  ;;  %3024 = vmatmul.mubr.msk.f32.gmra.mrb[12].mxu0 %vm249_vm1, %v3733_v43 }
  0x49   : > { %2910 = vmatprep.mubr.msk.f32.mxu1 %vm249_vm1, %v3736_v44  ;;  %3026 = vmatprep.mubr.msk.f32.mxu0 %vm249_vm1, %v3739_v45 }
  0x4c   : > { %2911 = vmatmul.mubr.msk.f32.gmra.mrb[6].mxu1 %vm249_vm1, %v3750_v46  ;;  %3027 = vmatmul.mubr.msk.f32.gmra.mrb[14].mxu0 %vm249_vm1, %v3753_v47 }
  0x4d   : > { %2913 = vmatprep.mubr.msk.f32.mxu1 %vm249_vm1, %v3756_v48  ;;  %3031 = vmatprep.mubr.msk.f32.mxu0 %vm249_vm1, %v3715_v40 }
  0x50   : > { %2914 = vmatmul.mubr.msk.f32.gmra.mrb[8].mxu1 %vm249_vm1, %v3767_v49  ;;  %3032 = vmatmul.mubr.msk.f32.vlgmr.msra.gmra.mrb[0].mxu0 %vm249_vm1, %v3730_v42 }
  0x51   : > { %3056 = vmatpush3.msk.msra.mxu0 %vm298_vm0, %v3616_v20  ;;  %2916 = vmatprep.mubr.msk.f32.mxu1 %vm249_vm1, %v3770_v50 }
  0x52   : > { %3034 = vmatprep.mubr.msk.f32.mxu0 %vm249_vm1, %v3736_v44  ;;  %3081 = vmatprep.subr.msk.mxu0 %vm298_vm0, %v2692_v51 }
  0x54   : > { %2917 = vmatmul.mubr.msk.f32.gmra.mrb[10].mxu1 %vm249_vm1, %v3784_v52  ;;  %3035 = vmatmul.mubr.msk.f32.gmra.mrb[2].mxu0 %vm249_vm1, %v3750_v46 }
  0x55   : > { %2919 = vmatprep.mubr.msk.f32.mxu1 %vm249_vm1, %v3789_v53  ;;  %3037 = vmatprep.mubr.msk.f32.mxu0 %vm249_vm1, %v3756_v48 }
  0x58   : > { %2920 = vmatmul.mubr.msk.f32.gmra.mrb[12].mxu1 %vm249_vm1, %v3801_v54  ;;  %3038 = vmatmul.mubr.msk.f32.gmra.mrb[4].mxu0 %vm249_vm1, %v3767_v49 }
  0x59   : > { %2922 = vmatprep.mubr.msk.f32.mxu1 %vm249_vm1, %v3804_v55  ;;  %3040 = vmatprep.mubr.msk.f32.mxu0 %vm249_vm1, %v3770_v50 }
  0x5c   : > { %2923 = vmatmul.mubr.msk.f32.gmra.mrb[14].mxu1 %vm249_vm1, %v3815_v56  ;;  %3041 = vmatmul.mubr.msk.f32.gmra.mrb[6].mxu0 %vm249_vm1, %v3784_v52 }
  0x5d   : > { %2927 = vmatprep.mubr.msk.f32.mxu1 %vm249_vm1, %v643_v57  ;;  %3043 = vmatprep.mubr.msk.f32.mxu0 %vm249_vm1, %v3789_v53 }
  0x60   : > { %2928 = vmatmul.mubr.msk.f32.vlgmr.msra.gmra.mrb[0].mxu1 %vm249_vm1, %v644_v58  ;;  %3044 = vmatmul.mubr.msk.f32.gmra.mrb[8].mxu0 %vm249_vm1, %v3801_v54 }
  0x61   : > { %2952 = vmatpush3.msk.msra.mxu1 %vm298_vm0, %v2520_v37  ;;  %2930 = vmatprep.mubr.msk.f32.mxu1 %vm249_vm1, %v3594_v16 }
  0x62   : > { %3046 = vmatprep.mubr.msk.f32.mxu0 %vm249_vm1, %v3804_v55  ;;  %3107 = vmatprep.subr.msk.mxu1 %vm298_vm0, %v3512_v1 }
  0x64   : > { %2931 = vmatmul.mubr.msk.f32.gmra.mrb[2].mxu1 %vm249_vm1, %v3605_v17  ;;  %3047 = vmatmul.mubr.msk.f32.gmra.mrb[10].mxu0 %vm249_vm1, %v3815_v56  ;;  %v3996_v17 = vld [vmem:[%s4117_s3] ss:$0 sm:$0xff] }
  0x65   : > { %2933 = vmatprep.mubr.msk.f32.mxu1 %vm249_vm1, %v3611_v19  ;;  %3049 = vmatprep.mubr.msk.f32.mxu0 %vm249_vm1, %v3835_v59 }
  0x68   : > { %2934 = vmatmul.mubr.msk.f32.gmra.mrb[4].mxu1 %vm249_vm1, %v3629_v22  ;;  %3050 = vmatmul.mubr.msk.f32.gmra.mrb[12].mxu0 %vm249_vm1, %v2621_v60 }
  0x69   : > { %2936 = vmatprep.mubr.msk.f32.mxu1 %vm249_vm1, %v3637_v24  ;;  %3052 = vmatprep.mubr.msk.f32.mxu0 %vm249_vm1, %v2622_v61 }
  0x6c   : > { %2937 = vmatmul.mubr.msk.f32.gmra.mrb[6].mxu1 %vm249_vm1, %v3653_v26  ;;  %3053 = vmatmul.mubr.msk.f32.gmra.mrb[14].mxu0 %vm249_vm1, %v2623_v62 }
  0x6d   : > { %2939 = vmatprep.mubr.msk.f32.mxu1 %vm249_vm1, %v3659_v28  ;;  %3057 = vmatprep.mubr.msk.f32.mxu0 %vm249_vm1, %v3543_v8 }
  0x70   : > { %2940 = vmatmul.mubr.msk.f32.gmra.mrb[8].mxu1 %vm249_vm1, %v3673_v30  ;;  %3058 = vmatmul.mubr.msk.f32.vlgmr.msra.gmra.mrb[0].mxu0 %vm249_vm1, %v3558_v11 }
  0x71   : > { %3082 = vmatpush3.msk.msra.mxu0 %vm298_vm0, %v2692_v51  ;;  %2942 = vmatprep.mubr.msk.f32.mxu1 %vm249_vm1, %v3677_v32 }
  0x72   : > { %3060 = vmatprep.mubr.msk.f32.mxu0 %vm249_vm1, %v3564_v12 }
  0x74   : > { %2943 = vmatmul.mubr.msk.f32.gmra.mrb[10].mxu1 %vm249_vm1, %v3688_v34  ;;  %3061 = vmatmul.mubr.msk.f32.gmra.mrb[2].mxu0 %vm249_vm1, %v3577_v13 }
  0x75   : > { %2945 = vmatprep.mubr.msk.f32.mxu1 %vm249_vm1, %v3694_v36  ;;  %3063 = vmatprep.mubr.msk.f32.mxu0 %vm249_vm1, %v3580_v14  ;;  %v3991_v14 = vld [vmem:[%s4116_s2] ss:$0 sm:$0xff] }
  0x78   : > { %2946 = vmatmul.mubr.msk.f32.gmra.mrb[12].mxu1 %vm249_vm1, %v3710_v39  ;;  %3064 = vmatmul.mubr.msk.f32.gmra.mrb[4].mxu0 %vm249_vm1, %v3591_v15 }
  0x79   : > { %2948 = vmatprep.mubr.msk.f32.mxu1 %vm249_vm1, %v3718_v41  ;;  %3066 = vmatprep.mubr.msk.f32.mxu0 %vm249_vm1, %v3608_v18 }
  0x7c   : > { %2949 = vmatmul.mubr.msk.f32.gmra.mrb[14].mxu1 %vm249_vm1, %v3733_v43  ;;  %3067 = vmatmul.mubr.msk.f32.gmra.mrb[6].mxu0 %vm249_vm1, %v3626_v21 }
  0x7d   : > { %2953 = vmatprep.mubr.msk.f32.mxu1 %vm249_vm1, %v3691_v35  ;;  %3069 = vmatprep.mubr.msk.f32.mxu0 %vm249_vm1, %v3634_v23 }
  0x80   : > { %2954 = vmatmul.mubr.msk.f32.vlgmr.msra.gmra.mrb[0].mxu1 %vm249_vm1, %v3707_v38  ;;  %3070 = vmatmul.mubr.msk.f32.gmra.mrb[8].mxu0 %vm249_vm1, %v3650_v25 }
  0x81   : > { %3108 = vmatpush3.msk.msra.mxu1 %vm298_vm0, %v3512_v1  ;;  %2956 = vmatprep.mubr.msk.f32.mxu1 %vm249_vm1, %v3715_v40  ;;  %v2656_v1 = vld [vmem:[%s3534_s9 + $0xd9] sm:$0xff]  ;;  %s3407_s9 = smov [#allocation2]  }
  0x82   : > { %3072 = vmatprep.mubr.msk.f32.mxu0 %vm249_vm1, %v3656_v27  ;;  %s3315_s11 = sshll.u32 %s3407_s9, 4  ;;  %s3316_s11 = int_to_ptr.vmem [resolvable:$false] %s3315_s11 }
  0x83   : > { %s3317_s12 = scalar_lea.vmem %s3316_s11, 4096  ;;  %p3318_p2 = scmp.lt.s32.totalorder %s4056_s19, %s3316_s11 }
  0x84   : > { %2957 = vmatmul.mubr.msk.f32.gmra.mrb[2].mxu1 %vm249_vm1, %v3730_v42  ;;  %3073 = vmatmul.mubr.msk.f32.gmra.mrb[10].mxu0 %vm249_vm1, %v3670_v29  ;;  %p3319_p4 = scmp.lt.s32.totalorder %s3317_s12, %s3311_s10 }
  0x85   : > { %2959 = vmatprep.mubr.msk.f32.mxu1 %vm249_vm1, %v3736_v44  ;;  %3075 = vmatprep.mubr.msk.f32.mxu0 %vm249_vm1, %v2654_v63 }
  0x86   : > { %p3320_p5 = por %p3319_p4, %p3318_p2 }
  0x88   : > { %2960 = vmatmul.mubr.msk.f32.gmra.mrb[4].mxu1 %vm249_vm1, %v3750_v46  ;;  %3076 = vmatmul.mubr.msk.f32.gmra.mrb[12].mxu0 %vm249_vm1, %v2655_v0  ;;  %p3321_p6 = pnand %p3320_p5, %p3314_p1 }
  0x89   : > { %2962 = vmatprep.mubr.msk.f32.mxu1 %vm249_vm1, %v3756_v48  ;;  %3078 = vmatprep.mubr.msk.f32.mxu0 %vm249_vm1, %v2656_v1 }
  0x8c   : > { %2963 = vmatmul.mubr.msk.f32.gmra.mrb[6].mxu1 %vm249_vm1, %v3767_v49  ;;  %3079 = vmatmul.mubr.msk.f32.gmra.mrb[14].mxu0 %vm249_vm1, %v2657_v2 }
  0x8d   : > { %2965 = vmatprep.mubr.msk.f32.mxu1 %vm249_vm1, %v3770_v50  ;;  %3083 = vmatprep.mubr.msk.f32.mxu0 %vm249_vm1, %v3611_v19 }
  0x90   : > { %2966 = vmatmul.mubr.msk.f32.gmra.mrb[8].mxu1 %vm249_vm1, %v3784_v52  ;;  %3084 = vmatmul.mubr.msk.f32.vlgmr.msra.gmra.mrb[0].mxu0 %vm249_vm1, %v3629_v22 }
  0x91   : > { %2968 = vmatprep.mubr.msk.f32.mxu1 %vm249_vm1, %v3789_v53  ;;  %3086 = vmatprep.mubr.msk.f32.mxu0 %vm249_vm1, %v3637_v24 }
  0x94   : > { %2969 = vmatmul.mubr.msk.f32.gmra.mrb[10].mxu1 %vm249_vm1, %v3801_v54  ;;  %3087 = vmatmul.mubr.msk.f32.gmra.mrb[2].mxu0 %vm249_vm1, %v3653_v26 }
  0x95   : > { %2971 = vmatprep.mubr.msk.f32.mxu1 %vm249_vm1, %v3804_v55  ;;  %3089 = vmatprep.mubr.msk.f32.mxu0 %vm249_vm1, %v3659_v28 }
  0x98   : > { %2972 = vmatmul.mubr.msk.f32.gmra.mrb[12].mxu1 %vm249_vm1, %v3815_v56  ;;  %3090 = vmatmul.mubr.msk.f32.gmra.mrb[4].mxu0 %vm249_vm1, %v3673_v30 }
  0x99   : > { %2974 = vmatprep.mubr.msk.f32.mxu1 %vm249_vm1, %v3835_v59  ;;  %3092 = vmatprep.mubr.msk.f32.mxu0 %vm249_vm1, %v3677_v32 }
  0x9c   : > { %2975 = vmatmul.mubr.msk.f32.gmra.mrb[14].mxu1 %vm249_vm1, %v2621_v60  ;;  %3093 = vmatmul.mubr.msk.f32.gmra.mrb[6].mxu0 %vm249_vm1, %v3688_v34 }
  0x9d   : > { %2991 = vmatprep.mubr.msk.f32.mxu1 %vm249_vm1, %v3608_v18  ;;  %3095 = vmatprep.mubr.msk.f32.mxu0 %vm249_vm1, %v3694_v36 }
  0xa0   : > { %2992 = vmatmul.mubr.msk.f32.vlgmr.msra.gmra.mrb[8].mxu1 %vm249_vm1, %v3626_v21  ;;  %3096 = vmatmul.mubr.msk.f32.gmra.mrb[8].mxu0 %vm249_vm1, %v3710_v39 }
  0xa1   : > { %2994 = vmatprep.mubr.msk.f32.mxu1 %vm249_vm1, %v3634_v23  ;;  %3098 = vmatprep.mubr.msk.f32.mxu0 %vm249_vm1, %v3718_v41 }
  0xa4   : > { %2995 = vmatmul.mubr.msk.f32.gmra.mrb[10].mxu1 %vm249_vm1, %v3650_v25  ;;  %3099 = vmatmul.mubr.msk.f32.gmra.mrb[10].mxu0 %vm249_vm1, %v3733_v43 }
  0xa5   : > { %2997 = vmatprep.mubr.msk.f32.mxu1 %vm249_vm1, %v3656_v27  ;;  %3101 = vmatprep.mubr.msk.f32.mxu0 %vm249_vm1, %v3739_v45 }
  0xa8   : > { %2998 = vmatmul.mubr.msk.f32.gmra.mrb[12].mxu1 %vm249_vm1, %v3670_v29  ;;  %3102 = vmatmul.mubr.msk.f32.gmra.mrb[12].mxu0 %vm249_vm1, %v3753_v47 }
  0xa9   : > { %3000 = vmatprep.mubr.msk.f32.mxu1 %vm249_vm1, %v2654_v63  ;;  %3104 = vmatprep.mubr.msk.f32.mxu0 %vm249_vm1, %v2690_v3 }
  0xac   : > { %3001 = vmatmul.mubr.msk.f32.gmra.mrb[14].mxu1 %vm249_vm1, %v2655_v0  ;;  %3105 = vmatmul.mubr.msk.f32.gmra.mrb[14].mxu0 %vm249_vm1, %v2691_v4 }
 0x153   : > { %v2955_v5 = vpop.f32.mrb[0].mxu1 }
 0x154   : > { %v1011_v6 = vpop.f32.mrb[1].mxu1 }
 0x157   : > { %v2958_v7 = vpop.f32.mrb[2].mxu1 }
 0x158   : > { %v1021_v8 = vpop.f32.mrb[3].mxu1 }
 0x15b   : > { %v2961_v9 = vpop.f32.mrb[4].mxu1 }
 0x15c   : > { %v1031_v10 = vpop.f32.mrb[5].mxu1 }
 0x15f   : > { %v2964_v11 = vpop.f32.mrb[6].mxu1 }
 0x160   : > { %v1041_v12 = vpop.f32.mrb[7].mxu1 }
 0x163   : > { %v3085_v13 = vpop.f32.mrb[0].mxu0 }
 0x164   : > { %v3109_v15 = vadd.f32 %v3085_v13, %v2955_v5  ;;  %v2164_v16 = vpop.f32.mrb[1].mxu0 }
 0x165   : > { %v3110_v18 = vadd.f32 %v2164_v16, %v1011_v6 }
 0x166   : > { %v2267_v19 = vmul.f32 %v3109_v15, %v3991_v14 }
 0x167   : > { %v2266_v20 = vmul.f32 %v3110_v18, %v3991_v14  ;;  %v3088_v21 = vpop.f32.mrb[2].mxu0 }
 0x168   : > { %v2290_v22 = vadd.f32 %v3996_v17, %v2267_v19  ;;  %v3111_v23 = vadd.f32 %v3088_v21, %v2958_v7  ;;  %v2174_v24 = vpop.f32.mrb[3].mxu0 }
 0x169   : > { %v2289_v25 = vadd.f32 %v3996_v17, %v2266_v20  ;;  %v3112_v26 = vadd.f32 %v2174_v24, %v1021_v8 }
 0x16a   : > { %v2306_v27 = vmax.f32 %v2290_v22, 0.0  ;;  %v2269_v28 = vmul.f32 %v3111_v23, %v3991_v14 }
 0x16b   : > { %v2305_v29 = vmax.f32 %v2289_v25, 0.0  ;;  %v2268_v30 = vmul.f32 %v3112_v26, %v3991_v14  ;;  %v3091_v31 = vpop.f32.mrb[4].mxu0 }
 0x16c   : > { %2322 = vst [vmem:[%s4006_s13 + $0x8] sm:$0xff] %v2306_v27  ;;  %v2292_v32 = vadd.f32 %v3996_v17, %v2269_v28  ;;  %v3113_v33 = vadd.f32 %v3091_v31, %v2961_v9  ;;  %v2184_v34 = vpop.f32.mrb[5].mxu0 }
 0x16d   : > { %2321 = vst [vmem:[%s4006_s13] sm:$0xff] %v2305_v29  ;;  %v2291_v35 = vadd.f32 %v3996_v17, %v2268_v30  ;;  %v3114_v36 = vadd.f32 %v2184_v34, %v1031_v10 }
 0x16e   : > { %v2308_v37 = vmax.f32 %v2292_v32, 0.0  ;;  %v2271_v38 = vmul.f32 %v3113_v33, %v3991_v14 }
 0x16f   : > { %v2307_v39 = vmax.f32 %v2291_v35, 0.0  ;;  %v2270_v40 = vmul.f32 %v3114_v36, %v3991_v14  ;;  %v3094_v41 = vpop.f32.mrb[6].mxu0 }
 0x170   : > { %2324 = vst [vmem:[%s4006_s13 + $0x18] sm:$0xff] %v2308_v37  ;;  %v2294_v42 = vadd.f32 %v3996_v17, %v2271_v38  ;;  %v3115_v43 = vadd.f32 %v3094_v41, %v2964_v11  ;;  %v2194_v44 = vpop.f32.mrb[7].mxu0 }
 0x171   : > { %2323 = vst [vmem:[%s4006_s13 + $0x10] sm:$0xff] %v2307_v39  ;;  %v2293_v45 = vadd.f32 %v3996_v17, %v2270_v40  ;;  %v3116_v46 = vadd.f32 %v2194_v44, %v1041_v12 }
 0x172   : > { %v2310_v47 = vmax.f32 %v2294_v42, 0.0  ;;  %v2273_v48 = vmul.f32 %v3115_v43, %v3991_v14 }
 0x173   : > { %v2309_v49 = vmax.f32 %v2293_v45, 0.0  ;;  %v2272_v50 = vmul.f32 %v3116_v46, %v3991_v14  ;;  %v2993_v51 = vpop.f32.mrb[8].mxu1  ;;  %v3097_v52 = vpop.f32.mrb[8].mxu0 }
 0x174   : > { %2326 = vst [vmem:[%s4006_s13 + $0x28] sm:$0xff] %v2310_v47  ;;  %v2296_v53 = vadd.f32 %v3996_v17, %v2273_v48  ;;  %v3117_v54 = vadd.f32 %v3097_v52, %v2993_v51  ;;  %v1281_v55 = vpop.f32.mrb[9].mxu1  ;;  %v2204_v56 = vpop.f32.mrb[9].mxu0 }
 0x175   : > { %2325 = vst [vmem:[%s4006_s13 + $0x20] sm:$0xff] %v2309_v49  ;;  %v2295_v57 = vadd.f32 %v3996_v17, %v2272_v50  ;;  %v3118_v58 = vadd.f32 %v2204_v56, %v1281_v55 }
 0x176   : > { %v2312_v59 = vmax.f32 %v2296_v53, 0.0  ;;  %v2275_v60 = vmul.f32 %v3117_v54, %v3991_v14 }
 0x177   : > { %v2311_v61 = vmax.f32 %v2295_v57, 0.0  ;;  %v2274_v62 = vmul.f32 %v3118_v58, %v3991_v14  ;;  %v2996_v63 = vpop.f32.mrb[10].mxu1  ;;  %v3100_v0 = vpop.f32.mrb[10].mxu0 }
 0x178   : > { %2328 = vst [vmem:[%s4006_s13 + $0x38] sm:$0xff] %v2312_v59  ;;  %v2298_v1 = vadd.f32 %v3996_v17, %v2275_v60  ;;  %v3119_v2 = vadd.f32 %v3100_v0, %v2996_v63  ;;  %v1291_v3 = vpop.f32.mrb[11].mxu1  ;;  %v2214_v4 = vpop.f32.mrb[11].mxu0 }
 0x179   : > { %2327 = vst [vmem:[%s4006_s13 + $0x30] sm:$0xff] %v2311_v61  ;;  %v2297_v5 = vadd.f32 %v3996_v17, %v2274_v62  ;;  %v3120_v6 = vadd.f32 %v2214_v4, %v1291_v3 }
 0x17a   : > { %v2314_v7 = vmax.f32 %v2298_v1, 0.0  ;;  %v2277_v8 = vmul.f32 %v3119_v2, %v3991_v14 }
 0x17b   : > { %v2313_v9 = vmax.f32 %v2297_v5, 0.0  ;;  %v2276_v10 = vmul.f32 %v3120_v6, %v3991_v14  ;;  %v2999_v11 = vpop.f32.mrb[12].mxu1  ;;  %v3103_v12 = vpop.f32.mrb[12].mxu0 }
 0x17c   : > { %2330 = vst [vmem:[%s4006_s13 + $0x48] sm:$0xff] %v2314_v7  ;;  %v2300_v13 = vadd.f32 %v3996_v17, %v2277_v8  ;;  %v3121_v15 = vadd.f32 %v3103_v12, %v2999_v11  ;;  %v1301_v16 = vpop.f32.mrb[13].mxu1  ;;  %v2224_v18 = vpop.f32.mrb[13].mxu0 }
 0x17d   : > { %2329 = vst [vmem:[%s4006_s13 + $0x40] sm:$0xff] %v2313_v9  ;;  %v2299_v19 = vadd.f32 %v3996_v17, %v2276_v10  ;;  %v3122_v20 = vadd.f32 %v2224_v18, %v1301_v16 }
 0x17e   : > { %v2316_v21 = vmax.f32 %v2300_v13, 0.0  ;;  %v2279_v22 = vmul.f32 %v3121_v15, %v3991_v14 }
 0x17f   : > { %v2315_v23 = vmax.f32 %v2299_v19, 0.0  ;;  %v2278_v24 = vmul.f32 %v3122_v20, %v3991_v14  ;;  %v3002_v25 = vpop.f32.mrb[14].mxu1  ;;  %v3106_v26 = vpop.f32.mrb[14].mxu0 }
 0x180   : > { %2332 = vst [vmem:[%s4006_s13 + $0x58] sm:$0xff] %v2316_v21  ;;  %v2302_v27 = vadd.f32 %v3996_v17, %v2279_v22  ;;  %v3123_v28 = vadd.f32 %v3106_v26, %v3002_v25  ;;  %v1311_v29 = vpop.f32.mrb[15].mxu1  ;;  %v2234_v30 = vpop.f32.mrb[15].mxu0 }
 0x181   : > { %2331 = vst [vmem:[%s4006_s13 + $0x50] sm:$0xff] %v2315_v23  ;;  %v2301_v31 = vadd.f32 %v3996_v17, %v2278_v24  ;;  %v3124_v32 = vadd.f32 %v2234_v30, %v1311_v29 }
 0x182   : > { %v2318_v33 = vmax.f32 %v2302_v27, 0.0  ;;  %v2281_v34 = vmul.f32 %v3123_v28, %v3991_v14 }
 0x183   : > { %v2317_v35 = vmax.f32 %v2301_v31, 0.0  ;;  %v2280_v36 = vmul.f32 %v3124_v32, %v3991_v14 }
 0x184   : > { %2334 = vst [vmem:[%s4006_s13 + $0x68] sm:$0xff] %v2318_v33  ;;  %v2304_v37 = vadd.f32 %v3996_v17, %v2281_v34 }
 0x185   : > { %2333 = vst [vmem:[%s4006_s13 + $0x60] sm:$0xff] %v2317_v35  ;;  %v2303_v38 = vadd.f32 %v3996_v17, %v2280_v36 }
 0x186   : > { %v2320_v39 = vmax.f32 %v2304_v37, 0.0 }
 0x187   : > { %v2319_v14 = vmax.f32 %v2303_v38, 0.0 }
 0x188   : > { %2336 = vst [vmem:[%s4006_s13 + $0x78] sm:$0xff] %v2320_v39 }
 0x189   : > { %2335 = vst [vmem:[%s4006_s13 + $0x70] sm:$0xff] %v2319_v14 }
 0x18a   : > { %3324 = shalt.err (!%p3321_p6)
}
 0x18b   : > { %s3325_s6 = scalar_lea.hbm %s4054_s5, 2048  ;;  %s3329_s23 = scalar_lea.hbm %s4118_s4, 8192 }
 0x18c   : > { %p3326_p7 = scmp.ne.s32.totalorder %s4054_s5, %s3325_s6  ;;  %p3330_p11 = scmp.lt.u32.totalorder %s4054_s5, %s4118_s4 }
 0x18d   : > { %p3331_p12 = scmp.lt.u32.totalorder %s3329_s23, %s3325_s6  ;;  %p3333_p0 = scmp.lt.u32.totalorder %s3325_s6, %s4054_s5 }
 0x18e   : > { %p3327_p9 = pnand %p3326_p7, %p3486_p3 }
 0x18f   : > { %p3332_p13 = por %p3331_p12, %p3330_p11 }
 0x190   : > { %p3328_p10 = pneg %p3327_p9 }
 0x191   : > { %p3334_p1 = por %p3333_p0, %p3332_p13 }
 0x193   : > { %p3335_p2 = pnand %p3334_p1, %p3328_p10 }
 0x195   : > { %3338 = shalt.err (!%p3335_p2)
}
 0x196   : > { %s3408_s27 = smov 128   ;;  %s3409_s30 = smov 8  }
 0x197   : > { %3238 = dma.vmem_to_hbm [thread:$0]  (%p3486_p3), %s4056_s19, 2048, %s4054_s5, %s4062_s8, %s3408_s27, %s3408_s27, %s3409_s30  }
 0x198 PF: > { %p3244_p4 = scmp.ge.s32.totalorder %s3405_s22, 2  ;;  %s2369_s10 = sand.u32 1, %s3377_s15  }
 0x199   : > { %s2370_s9 = scalar_lea.sflag [#allocation3], %s2369_s10 }
 0x19a   : > { %p3241_p5 = pnand %p3244_p4, %p3495_p8 }
 0x19c   : > { %3372 = dma.done.wait (!%p3241_p5), %s2370_s9, 2048  }
 0x19d   : > { %3374 = vsyncadd (!%p3241_p5), %s2370_s9, 4294965248  ;;  %s17_s22 = sadd.s32 1, %s3405_s22   ;;  %s4121_s15 = smov %s3381_s16 }
 0x19e   : > { %p14_p6 = scmp.ge.s32.totalorder %s17_s22, 6   ;;  %s4122_s16 = smov %s3385_s17 }
 0x19f   : > { %s4123_s17 = smov %s3504_s7  ;;  %s4124_s18 = smov %s3397_s20 }
 0x1a0   : > { %s4125_s19 = smov %s3401_s21  ;;  %s4126_s20 = smov %s4129_s25 }
 0x1a1   : > { %s4127_s21 = smov %s4133_s26  ;;  %16 = sbr.rel (!%p14_p6) target bundleno = 5 (0x5), region = 82 }
 0x1a8   :  { %2375 = vsyncpa [#allocation3], 1 }
 0x1a9   :  { %2377 = vsyncpa [#allocation3 + $0x1], 1 }

</bundles_post_ra>
